<compile_context>
chip_gen: v5e
topology: v5e:2x2
jax: 0.10.0
libtpu: 0.0.40
codegen_flags: <defaults>
</compile_context>

<pallas_src>
import jax
import jax.numpy as jnp
from jax.experimental import pallas as pl
from jax.experimental.pallas import tpu as pltpu


def _round_up(x, m):
    return (x + m - 1) // m * m


def _cdiv(a, b):
    return (a + b - 1) // b


# -----------------------------------------------------------------------------
# Kernel: K-tiled matmul with a grid-resident f32 accumulator.
#   grid = (n_split, nk); axis 0 "parallel" (v7x dual-TC / megacore friendly),
#   axis 1 = D reduction.
# -----------------------------------------------------------------------------
def _tta_matmul_kernel(lhs_ref, wt_ref, out_ref):
    # lhs_ref: (B,  tk)  bf16  flattened-image chunk
    # wt_ref : (Kp, tk)  bf16  folded-TTA weight chunk (stored transposed)
    # out_ref: (B,  Kp)  f32   per-split partial result (grid resident)
    @pl.when(pl.program_id(1) == 0)
    def _():
        out_ref[...] = jnp.zeros_like(out_ref)

    out_ref[...] += jax.lax.dot_general(
        lhs_ref[...], wt_ref[...],
        dimension_numbers=(((1,), (1,)), ((), ())),   # A @ B^T, contract on tk
        preferred_element_type=jnp.float32)


# -----------------------------------------------------------------------------
# One-time parameter prep: fold flips + de-augmentation + mean merge into a
# single (transposed, bf16, K-padded) weight and a bias/offset vector.
# -----------------------------------------------------------------------------
def prepare_tta_params(w_mat, bias, flags_list, image_chw,
                       *, n_split=2, tk_cap=8192):
    C, H, W_img = image_chw
    D, twoK = w_mat.shape
    T = len(flags_list)

    col = jnp.arange(twoK)
    is_x = (col % 2 == 0)          # even columns = x, odd = y

    w32 = w_mat.astype(jnp.float32)
    b32 = bias.astype(jnp.float32)
    base_idx = jnp.arange(D).reshape(C, H, W_img)

    w_comb = jnp.zeros((D, twoK), jnp.float32)
    b_comb = jnp.zeros((twoK,), jnp.float32)
    for hf, vf in flags_list:
        idx = base_idx
        if hf:
            idx = jnp.flip(idx, axis=2)     # horizontal flip = width axis
        if vf:
            idx = jnp.flip(idx, axis=1)     # vertical flip   = height axis
        perm = idx.reshape(-1)              # involution: aug @ W == img @ W[perm]
        sign = jnp.where(is_x, -1.0 if hf else 1.0, -1.0 if vf else 1.0)
        off = jnp.where(is_x, float(W_img) if hf else 0.0,
                        float(H) if vf else 0.0)
        w_comb = w_comb + w32[perm, :] * sign[None, :]
        b_comb = b_comb + b32 * sign + off
    w_comb = w_comb / T
    b_comb = b_comb / T

    # Tiling: split D over the leading "parallel" axis, then K-tile each half.
    tk = min(tk_cap, _round_up(_cdiv(D, n_split), 128))
    nk = _cdiv(D, n_split * tk)
    d_pad = n_split * nk * tk

    # Pad keypoint dim only to the bf16 sublane pack (10 -> 16): free in HBM
    # (tiled layout pads to 16 sublanes anyway); NOT padded to 128 lanes.
    k_pad = _round_up(twoK, 16)

    wt = jnp.zeros((k_pad, d_pad), jnp.float32)
    wt = wt.at[:twoK, :D].set(w_comb.T)
    wt = wt.astype(jnp.bfloat16)            # bf16 weight stream, f32 accumulate

    return dict(wt=wt, b_comb=b_comb, twoK=twoK, k_pad=k_pad,
                D=D, d_pad=d_pad, tk=tk, nk=nk, n_split=n_split)


def keypoints_tta_forward(image, params):
    """Pallas implementation of KeypointsTTAWrapper.forward (merge_mode='mean',
    scaled=False) for a flatten->linear keypoints head whose TTA-folded weights
    were produced by prepare_tta_params."""
    B = image.shape[0]
    D, d_pad = params["D"], params["d_pad"]
    tk, nk, n_split = params["tk"], params["nk"], params["n_split"]
    k_pad, twoK = params["k_pad"], params["twoK"]
    wt, b_comb = params["wt"], params["b_comb"]

    lhs = image.reshape(B, D).astype(jnp.bfloat16)
    if d_pad != D:
        lhs = jnp.pad(lhs, ((0, 0), (0, d_pad - D)))

    lhs_idx = lambda p, k: (0, p * nk + k)
    wt_idx = lambda p, k: (0, p * nk + k)
    if nk >= 4:
        # deeper pipelining on the (short-per-step) weight DMAs at prod scale
        wt_spec = pl.BlockSpec((k_pad, tk), wt_idx, pipeline_mode=pl.Buffered(3))
    else:
        wt_spec = pl.BlockSpec((k_pad, tk), wt_idx)

    grid_spec = pltpu.PrefetchScalarGridSpec(
        num_scalar_prefetch=0,
        grid=(n_split, nk),
        in_specs=[
            pl.BlockSpec((B, tk), lhs_idx),     # image chunk
            wt_spec,                            # folded weight chunk
        ],
        out_specs=pl.BlockSpec((None, B, k_pad), lambda p, k: (p, 0, 0)),
    )

    partials = pl.pallas_call(
        _tta_matmul_kernel,
        out_shape=jax.ShapeDtypeStruct((n_split, B, k_pad), jnp.float32),
        grid_spec=grid_spec,
        compiler_params=pltpu.CompilerParams(
            dimension_semantics=("parallel", "arbitrary"),
            vmem_limit_bytes=32 * 1024 * 1024),
    )(lhs, wt)

    # tiny epilogue: combine per-core partials, add folded bias + flip offsets
    return partials.sum(axis=0)[:, :twoK] + b_comb[None, :]


# -----------------------------------------------------------------------------
# Pure-JAX reference mirroring the PyTorch module semantics exactly (f32).
# -----------------------------------------------------------------------------
def keypoints_tta_reference(image, w_mat, bias, flags_list):
    B, C, H, W_img = image.shape
    acc = None
    for hf, vf in flags_list:
        img = image
        if hf:
            img = jnp.flip(img, axis=3)
        if vf:
            img = jnp.flip(img, axis=2)
        out = img.reshape(B, -1) @ w_mat + bias          # model(aug_image)
        kp = out.reshape(B, -1, 2)
        x = kp[..., 0] / W_img                           # scaled=False
        y = kp[..., 1] / H
        if hf:
            x = 1.0 - x                                  # deaugment_keypoints
        if vf:
            y = 1.0 - y
        kp = jnp.stack([x, y], axis=-1)
        acc = kp if acc is None else acc + kp
    res = acc / len(flags_list)                          # merge_mode="mean"
    res = jnp.stack([res[..., 0] * W_img, res[..., 1] * H], axis=-1)
    return res.reshape(B, -1)


if __name__ == "__main__":
    key = jax.random.PRNGKey(0)
    k_img, k_w, k_b = jax.random.split(key, 3)

    # small shapes consistent with the module's forward
    B, C, H, W = 2, 4, 16, 16
    K = 5                                    # number of keypoints -> output 2K
    D = C * H * W

    image = jax.random.normal(k_img, (B, C, H, W), dtype=jnp.float32)
    w_mat = jax.random.normal(k_w, (D, 2 * K), dtype=jnp.float32) * 0.02
    bias = jax.random.normal(k_b, (2 * K,), dtype=jnp.float32) * 0.1

    # Compose([HorizontalFlip(), VerticalFlip()]) -> product of apply flags
    flags_list = [(False, False), (False, True), (True, False), (True, True)]

    params = prepare_tta_params(w_mat, bias, flags_list, (C, H, W))
    out = keypoints_tta_forward(image, params)
    out = jax.block_until_ready(out)

    ref = keypoints_tta_reference(image, w_mat, bias, flags_list)
    assert out.shape == (B, 2 * K)
    # bf16 streams with f32 accumulation -> bf16-level tolerance
    assert jnp.allclose(out, ref, atol=1e-2, rtol=1e-2), (
        float(jnp.max(jnp.abs(out - ref))), out, ref)

    print("KERNEL_OK")
</pallas_src>

<mosaic_0001>
module attributes {stable_mosaic.version = 11 : i64} {
  func.func @_tta_matmul_kernel(%arg0: i32, %arg1: i32, %arg2: memref<2x512xbf16, #tpu.memory_space<vmem>>, %arg3: memref<16x512xbf16, #tpu.memory_space<vmem>>, %arg4: memref<1x2x16xf32, #tpu.memory_space<vmem>>) attributes {dimension_semantics = [#tpu.dimension_semantics<parallel>, #tpu.dimension_semantics<arbitrary>], iteration_bounds = array<i64: 2, 1>, scalar_prefetch = 0 : i64, scratch_operands = 0 : i64, tpu.core_type = #tpu.core_type<tc>, window_params = [{transform_indices = @transform_0, window_bounds = array<i64: 2, 512>}, {transform_indices = @transform_1, window_bounds = array<i64: 16, 512>}, {transform_indices = @transform_2, window_bounds = array<i64: 1, 2, 16>}]} {
    %c0_i32 = arith.constant 0 : i32
    %0 = arith.cmpi eq, %arg1, %c0_i32 : i32
    %1 = arith.extui %0 : i1 to i32
    %c0_i32_0 = arith.constant 0 : i32
    %2 = arith.cmpi ne, %1, %c0_i32_0 : i32
    scf.if %2 {
      %cst_10 = arith.constant 0.000000e+00 : f32
      %12 = vector.broadcast %cst_10 : f32 to vector<2x16xf32>
      %c0_11 = arith.constant 0 : index
      %c0_12 = arith.constant 0 : index
      %c0_13 = arith.constant 0 : index
      %13 = vector.load %arg4[%c0_11, %c0_12, %c0_13] : memref<1x2x16xf32, #tpu.memory_space<vmem>>, vector<1x2x16xf32>
      %14 = vector.shape_cast %13 : vector<1x2x16xf32> to vector<2x16xf32>
      %15 = vector.shape_cast %12 : vector<2x16xf32> to vector<1x2x16xf32>
      tpu.vector_store %arg4[%c0_11, %c0_12, %c0_13], %15 {strides = array<i32>} : memref<1x2x16xf32, #tpu.memory_space<vmem>>, vector<1x2x16xf32>,
    } else {
    }
    %c0 = arith.constant 0 : index
    %c0_1 = arith.constant 0 : index
    %c0_2 = arith.constant 0 : index
    %3 = vector.load %arg4[%c0, %c0_1, %c0_2] : memref<1x2x16xf32, #tpu.memory_space<vmem>>, vector<1x2x16xf32>
    %4 = vector.shape_cast %3 : vector<1x2x16xf32> to vector<2x16xf32>
    %c0_3 = arith.constant 0 : index
    %c0_4 = arith.constant 0 : index
    %5 = vector.load %arg2[%c0_3, %c0_4] : memref<2x512xbf16, #tpu.memory_space<vmem>>, vector<2x512xbf16>
    %c0_5 = arith.constant 0 : index
    %c0_6 = arith.constant 0 : index
    %6 = vector.load %arg3[%c0_5, %c0_6] : memref<16x512xbf16, #tpu.memory_space<vmem>>, vector<16x512xbf16>
    %cst = arith.constant dense<0.000000e+00> : vector<2x16xf32>
    %7 = tpu.matmul %5, %6, %cst {dimension_numbers = #tpu.dot_dimension_numbers<[1], [1], [0], [0], [0, 0, 1, 0], [], []>} : vector<2x512xbf16>, vector<16x512xbf16>, vector<2x16xf32> -> vector<2x16xf32>
    %8 = arith.addf %4, %7 : vector<2x16xf32>
    %c0_7 = arith.constant 0 : index
    %c0_8 = arith.constant 0 : index
    %c0_9 = arith.constant 0 : index
    %9 = vector.load %arg4[%c0_7, %c0_8, %c0_9] : memref<1x2x16xf32, #tpu.memory_space<vmem>>, vector<1x2x16xf32>
    %10 = vector.shape_cast %9 : vector<1x2x16xf32> to vector<2x16xf32>
    %11 = vector.shape_cast %8 : vector<2x16xf32> to vector<1x2x16xf32>
    tpu.vector_store %arg4[%c0_7, %c0_8, %c0_9], %11 {strides = array<i32>} : memref<1x2x16xf32, #tpu.memory_space<vmem>>, vector<1x2x16xf32>,
    return
  }
  func.func @transform_0(%arg0: i32, %arg1: i32) -> (i32, i32) {
    %c1_i32 = arith.constant 1 : i32
    %0 = arith.muli %arg0, %c1_i32 : i32
    %1 = arith.addi %0, %arg1 : i32
    %c0_i32 = arith.constant 0 : i32
    %c0_i32_0 = arith.constant 0 : i32
    return %c0_i32, %1 : i32, i32
  }
  func.func @transform_1(%arg0: i32, %arg1: i32) -> (i32, i32) {
    %c1_i32 = arith.constant 1 : i32
    %0 = arith.muli %arg0, %c1_i32 : i32
    %1 = arith.addi %0, %arg1 : i32
    %c0_i32 = arith.constant 0 : i32
    %c0_i32_0 = arith.constant 0 : i32
    return %c0_i32, %1 : i32, i32
  }
  func.func @transform_2(%arg0: i32, %arg1: i32) -> (i32, i32, i32) {
    %c0_i32 = arith.constant 0 : i32
    %c0_i32_0 = arith.constant 0 : i32
    %c0_i32_1 = arith.constant 0 : i32
    return %arg0, %c0_i32, %c0_i32_0 : i32, i32, i32
  }
}

</mosaic_0001>

<bundles_post_ra>
// kernel: tpu_custom_call.1
= control target key start
LH: loop header
LB: loop body
LE: loop exit
PB: predicated region body
PF: predicated region fallthrough
CT: control target
= control target key end

     0   :  { %7 = vsyncpa [#allocation3], 0  ;;  %s865_s0 = inlined_call_operand.hbm [shape: bf16[2,1024], index: 0, kind: input, shape index: {}]   ;;  %s866_s1 = inlined_call_operand.hbm [shape: bf16[16,1024], index: 1, kind: input, shape index: {}]   ;;  %s867_s2 = inlined_call_operand.hbm [shape: f32[2,2,16], index: 2, kind: output, shape index: {}]  }
   0x1   :  { %9 = vsyncpa [#allocation3 + $0x1], 0 }
   0x2   :  { %10 = vsyncpa [#allocation6], 0 }
   0x3   :  { %12 = vsyncpa [#allocation6 + $0x1], 0 }
   0x4   :  { %13 = vsyncpa [#allocation4], 0 }
   0x5   :  { %15 = vsyncpa [#allocation4 + $0x1], 0  ;;  %s718_s9 = smov 0   ;;  %s720_s10 = smov 0  }
   0x6   :  { %s722_s11 = smov 0   ;;  %s724_s12 = smov 0  }
   0x7   :  { %s726_s13 = smov 0   ;;  %s728_s14 = smov 0  }
   0x8 LB: > { %s442_s15 = sadd.s32 4294967295, %s697_s14   ;;  %s443_s16 = sadd.s32 4294967294, %s697_s14   ;;  %s697_s14 = sphi %s728_s14, %s21_s14   ;;  %s693_s13 = sphi %s726_s13, %s877_s13   ;;  %s689_s12 = sphi %s724_s12, %s876_s12   ;;  %s685_s11 = sphi %s722_s11, %s875_s11   ;;  %s681_s10 = sphi %s720_s10, %s874_s10   ;;  %s677_s9 = sphi %s718_s9, %s873_s9  }
   0x9   : > { %s33_s17 = sadd.s32 1, %s693_s13  ;;  %s42_s18 = sadd.s32 1, %s685_s11 }
   0xa   : > { %p35_p0 = scmp.ge.s32.totalorder %s33_s17, 2  ;;  %p49_p1 = scmp.ne.s32.totalorder %s685_s11, %s681_s10 }
   0xb   : > { %p50_p2 = scmp.eq.s32.totalorder %s697_s14, 0  ;;  %p55_p3 = scmp.ne.s32.totalorder %s681_s10, %s677_s9 }
   0xc   : > { %s879_s17 = smov (%p35_p0, %s33_s17), 0  ;;  %p56_p5 = scmp.eq.s32.totalorder %s442_s15, 0 }
   0xd   : > { %p759_p4 = por %p50_p2, %p49_p1  ;;  %s39_s20 = ssub.s32 %s693_s13, %s879_s17 }
   0xe   : > { %p107_p6 = scmp.eq.s32.totalorder %s442_s15, 1  ;;  %p40_p7 = scmp.eq.s32.totalorder %s39_s20, 0 }
   0xf   : > { %p765_p8 = por %p56_p5, %p55_p3  ;;  %p113_p10 = scmp.eq.s32.totalorder %s443_s16, 1 }
  0x10   : > { %p769_p9 = por %p107_p6, %p49_p1  ;;  %p445_p12 = scmp.ge.s32.totalorder %s697_s14, 2 }
  0x11   : > { %s774_s23 = scalar_select %p40_p7, %s685_s11, %s42_s18  }
  0x12   : > { %p776_p11 = por %p113_p10, %p55_p3  ;;  %p497_p13 = scmp.lt.s32.totalorder %s697_s14, 2 }
  0x13   : > { %s783_s25 = sand.u32 1, %s685_s11   ;;  %s447_s27 = sshll.u32 %s693_s13, 2 }
  0x14   : > { %s446_s26 = sshll.u32 %s783_s25, 2  ;;  %s142_s30 = scalar_lea.hbm %s865_s0, %s447_s27 }
  0x15   : > { %s137_s3 = scalar_lea.vmem [#allocation2], %s446_s26  ;;  %s144_s5 = sshll.u32 %s142_s30, 4  ;;  %s145_s5 = int_to_ptr.hbm [resolvable:$true] %s144_s5 }
  0x16   : > { %s146_s4 = sshll.u32 %s137_s3, 4  ;;  %p792_p0 = pnand %p497_p13, %p759_p4  ;;  %s147_s4 = int_to_ptr.vmem [resolvable:$true] %s146_s4 }
  0x17   : > { %s448_s7 = sshll.u32 %s783_s25, 5  ;;  %s134_s8 = scalar_lea.sflag [#allocation3], %s783_s25 }
  0x18   : > { %489 = dma.hbm_to_vmem [thread:$0]  (!%p792_p0), %s145_s5, 64, %s147_s4, %s134_s8  }
  0x19   : > { %s475_s15 = sshll.u32 %s693_s13, 4  ;;  %p451_p1 = scmp.ge.s32.totalorder %s697_s14, 1 }
  0x1a   : > { %p174_p2 = scmp.lt.s32.totalorder %s697_s14, 3  ;;  %s163_s20 = scalar_lea.hbm %s866_s1, %s475_s15 }
  0x1b   : > { %s164_s26 = sshll.u32 %s163_s20, 4  ;;  %s157_s27 = scalar_lea.vmem [#allocation5], %s448_s7  ;;  %s165_s26 = int_to_ptr.hbm [resolvable:$true] %s164_s26 }
  0x1c   : > { %s166_s19 = sshll.u32 %s157_s27, 4  ;;  %p175_p3 = pnand %p451_p1, %p174_p2  ;;  %s167_s19 = int_to_ptr.vmem [resolvable:$true] %s166_s19 }
  0x1d   : > { %s154_s28 = scalar_lea.sflag [#allocation6], %s783_s25  ;;  %s699_s29 = smov 512  }
  0x1e   : > { %s700_s30 = smov 256   ;;  %s701_s3 = smov 16  }
  0x1f   : > { %492 = dma.hbm_to_vmem [thread:$0]  (!%p792_p0), %s165_s26, 512, %s167_s19, %s154_s28, %s699_s29, %s700_s30, %s701_s3  }
  0x20   : > { %178 = sbr.rel (%p175_p3) target bundleno = 196 (0xc4), region = 28  ;;  %s810_s4 = sand.u32 (!%p175_p3), 1, %s681_s10  }
  0x21   : > { %s452_s5 = sshll.u32 (!%p175_p3), %s810_s4, 2  ;;  %s181_s8 = scalar_lea.sflag (!%p175_p3), [#allocation3], %s810_s4 }
  0x22   : > { %s184_s7 = scalar_lea.vmem (!%p175_p3), [#allocation2], %s452_s5 }
  0x25   : > { %664 = dma.done.wait (%p765_p8), %s181_s8, 64  }
  0x26   : > { %666 = vsyncadd (%p765_p8), %s181_s8, 4294967232  ;;  %s453_s25 = sshll.u32 %s810_s4, 5  ;;  %s191_s6 = scalar_lea.sflag [#allocation6], %s810_s4 }
  0x27   : > { %s194_s15 = scalar_lea.vmem [#allocation5], %s453_s25 }
  0x28   : > { %668 = dma.done.wait (%p765_p8), %s191_s6, 512  }
  0x29   : > { %670 = vsyncadd (%p765_p8), %s191_s6, 4294966784  ;;  %v457_v0 = vld [vmem:[%s194_s15] sm:$0xf]  ;;  %v478_v1 = vld [vmem:[%s194_s15 + $0xc] sm:$0xf0]  ;;  %s454_s21 = sshll.u32 %s810_s4, 1 }
  0x2a   : > { %v476_v2 = vld [vmem:[%s194_s15 + $0x4] sm:$0xf]  ;;  %v458_v3 = vor.u32 %v478_v1, %v457_v0  ;;  %v459_v4 = vld [vmem:[%s194_s15 + $0x10] sm:$0xf0]  ;;  %v465_v5 = vld [vmem:[%s194_s15 + $0x8] sm:$0xf] }
  0x2b   : > { %v479_v6 = vld [vmem:[%s194_s15 + $0x14] sm:$0xf0]  ;;  %v462_v7 = vor.u32 %v476_v2, %v459_v4  ;;  %v477_v9 = vld [vmem:[%s194_s15 + $0xc] sm:$0xf]  ;;  %v467_v10 = vld [vmem:[%s194_s15 + $0x18] sm:$0xf0] }
  0x2c   : > { %v466_v8 = vor.u32 %v479_v6, %v465_v5  ;;  %v233_v11 = vld [vmem:[%s184_s7] sm:$0xf]  ;;  %275 = vmatpush.bf16.xpose.msra.mxu0 %v458_v3  ;;  %v470_v12 = vor.u32 %v477_v9, %v467_v10  ;;  %vm230_vm0 = vcmask 123904   ;;  %s220_s16 = scalar_lea.vmem [#allocation7], %s454_s21  ;;  %v702_v17 = vmov 0.0   ;;  %s472_s18 = sshll.u32 %s689_s12, 1 }
  0x2d   : > { %239 = vst [vmem:[#allocation1] ss:$9 sm:$0xff] %v233_v11  ;;  %288 = vmatpush.bf16.xpose.msra.mxu1 %v462_v7  ;;  %s334_s27 = scalar_lea.hbm %s867_s2, %s472_s18  ;;  %s336_s19 = sshll.u32 %s220_s16, 4  ;;  %s337_s19 = int_to_ptr.vmem [resolvable:$true] %s336_s19 }
  0x2e   : > { %301 = vmatpush.bf16.xpose.msra.mxu2 %v466_v8  ;;  %314 = vmatpush.bf16.xpose.msra.mxu3 %v470_v12  ;;  %231 = vst.msk [vmem:[%s220_s16] sm:$0x3] %vm230_vm0, %v702_v17  ;;  %s338_s28 = sshll.u32 %s334_s27, 4  ;;  %s324_s12 = scalar_lea.sflag [#allocation4], %s810_s4  ;;  %s339_s28 = int_to_ptr.hbm [resolvable:$true] %s338_s28 }
  0x2f   : > { %s625_s29 = sshra.s32 %s339_s28, 4  ;;  %s631_s8 = scalar_lea.hbm %s867_s2, 4  ;;  %s626_s29 = int_to_ptr.hbm [resolvable:$true] %s625_s29 }
  0x30   : > { %s627_s30 = scalar_lea.hbm %s626_s29, 2  ;;  %p632_p7 = scmp.lt.s32.totalorder %s626_s29, %s867_s2 }
  0x31   : > { %p628_p4 = scmp.ne.s32.totalorder %s626_s29, %s627_s30  ;;  %p633_p8 = scmp.lt.s32.totalorder %s631_s8, %s627_s30 }
  0x33   : > { %p629_p5 = pnand %p628_p4, %p769_p9  ;;  %p634_p10 = por %p633_p8, %p632_p7 }
  0x34   : > { %v240_v13 = vld [vmem:[#allocation1] sm:$0xff]  ;;  %v241_v14 = vld [vmem:[#allocation1 + $0x9] sm:$0xff]  ;;  %v242_v15 = vld [vmem:[#allocation1 + $0x12] sm:$0xff] }
  0x35   : > { %276 = vmatmul.bf16.vlgmr.msra.gmra.mxu0 %v240_v13  ;;  %289 = vmatmul.bf16.vlgmr.msra.gmra.mxu1 %v241_v14  ;;  %v243_v16 = vld [vmem:[#allocation1 + $0x1b] sm:$0xff]  ;;  %v232_v26 = vld [vmem:[%s220_s16] sm:$0x3]  ;;  %p630_p6 = pneg %p629_p5 }
  0x36   : > { %302 = vmatmul.bf16.vlgmr.msra.gmra.mxu2 %v242_v15  ;;  %315 = vmatmul.bf16.vlgmr.msra.gmra.mxu3 %v243_v16 }
  0x37   : > { %p635_p13 = pnand %p634_p10, %p630_p6 }
  0xb2   : > { %v277_v18 = vpop.f32.mrf.mxu0  ;;  %v290_v19 = vpop.f32.mrf.mxu1 }
  0xb3   : > { %v291_v20 = vadd.f32 %v290_v19, %v277_v18 }
  0xb9   : > { %v303_v21 = vpop.f32.mrf.mxu2  ;;  %v316_v22 = vpop.f32.mrf.mxu3 }
  0xba   : > { %v304_v23 = vadd.f32 %v303_v21, %v291_v20  ;;  %v279_v24 = vpop.f32.mrf.mxu0  ;;  %v292_v25 = vpop.f32.mrf.mxu1 }
  0xbc   : > { %v317_v27 = vadd.f32 %v316_v22, %v304_v23 }
  0xbe   : > { %v320_v28 = vadd.f32 %v317_v27, %v232_v26 }
  0xc0   : > { %322 = vst.msk [vmem:[%s220_s16] sm:$0x3] %vm230_vm0, %v320_v28 }
  0xc1   : > { %v305_v29 = vpop.f32.mrf.mxu2  ;;  %v318_v30 = vpop.f32.mrf.mxu3 }
  0xc2   : > { %638 = shalt.err (!%p635_p13)
}
  0xc3   : > { %484 = dma.vmem_to_hbm [thread:$0]  (%p769_p9), %s337_s19, 32, %s339_s28, %s324_s12  }
  0xc4 PF: > { %s350_s4 = sand.u32 1, %s677_s9   ;;  %p494_p0 = pnand %p445_p12, %p776_p11 }
  0xc5   : > { %s351_s6 = scalar_lea.sflag [#allocation4], %s350_s4 }
  0xc6   : > { %p495_p1 = pneg %p494_p0 }
  0xc8   : > { %672 = dma.done.wait (%p495_p1), %s351_s6, 32  }
  0xc9   : > { %674 = vsyncadd (%p495_p1), %s351_s6, 4294967264  ;;  %s21_s14 = sadd.s32 1, %s697_s14   ;;  %s873_s9 = smov %s681_s10 }
  0xca   : > { %p18_p2 = scmp.ge.s32.totalorder %s21_s14, 4   ;;  %s874_s10 = smov %s685_s11 }
  0xcb   : > { %s875_s11 = smov %s774_s23  ;;  %s876_s12 = smov %s693_s13 }
  0xcc   : > { %s877_s13 = smov %s879_s17  ;;  %20 = sbr.rel (!%p18_p2) target bundleno = 8 (0x8), region = 90 }
  0xd1   :  { %357 = vsyncpa [#allocation3], 1 }
  0xd2   :  { %359 = vsyncpa [#allocation3 + $0x1], 1 }
  0xd3   :  { %360 = vsyncpa [#allocation6], 1 }
  0xd4   :  { %362 = vsyncpa [#allocation6 + $0x1], 1 }
  0xd5   :  { %363 = vsyncpa [#allocation4], 1 }
  0xd6   :  { %365 = vsyncpa [#allocation4 + $0x1], 1 }

</bundles_post_ra>
